<compile_context>
chip_gen: v7x
topology: tpu7x:2x2x1
jax: 0.10.0
libtpu: 0.0.40
codegen_flags: <defaults>
</compile_context>

<pallas_src>
import math

import jax
import jax.numpy as jnp
from jax.experimental import pallas as pl
from jax.experimental.pallas import tpu as pltpu

# ---------------- model dims (small, consistent with the module) -------------
B = 2        # batch
S = 8        # sequence length
D = 32       # d_model (size)
H = 4        # number of attention heads
DK = D // H  # per-head dim
F = 64       # feed-forward hidden dim
EPS = 1e-6
NEG_INF = -1e9


def _torch_layernorm(y, gamma, beta):
    """STL2G LayerNorm: a_2*(x-mean)/(std+eps)+b_2, std = unbiased (N-1)."""
    n = y.shape[-1]
    mean = jnp.sum(y, axis=-1, keepdims=True) * (1.0 / n)
    var = jnp.sum((y - mean) ** 2, axis=-1, keepdims=True) * (1.0 / (n - 1))
    inv_std = pl.reciprocal(jnp.sqrt(var) + EPS, approx=False)   # EUP slot
    return gamma * (y - mean) * inv_std + beta


def encoder_layer_kernel(x_ref, mask_ref, wm_ref, w2_ref, vec_ref, out_ref):
    x = x_ref[...]                        # (B*S, D)
    wm = wm_ref[...]                      # (D, 3D + D + F) = [w_qkv | w_o | w_1]
    vecs = vec_ref[...]                   # (8, 128) packed small vectors

    w_qkv = wm[:, 0:3 * D]                # (D, 3D)
    w_o   = wm[:, 3 * D:4 * D]            # (D, D)
    w_1   = wm[:, 4 * D:4 * D + F]        # (D, F)

    b_qkv = vecs[0:1, 0:3 * D]            # (1, 3D)  bq|bk|bv
    b_o   = vecs[1:2, 0:D]
    g1    = vecs[2:3, 0:D]
    be1   = vecs[3:4, 0:D]
    b_1   = vecs[4:5, 0:F]
    b_2   = vecs[5:6, 0:D]
    g2    = vecs[6:7, 0:D]
    be2   = vecs[7:8, 0:D]

    # ---- fused Q/K/V projection: one (B*S, D) @ (D, 3D) MXU op --------------
    qkv = jnp.dot(x, w_qkv, preferred_element_type=jnp.float32) + b_qkv
    q = qkv[:, 0:D].reshape(B, S, D)
    k = qkv[:, D:2 * D].reshape(B, S, D)
    v = qkv[:, 2 * D:3 * D].reshape(B, S, D)

    # Additive attention bias: 0 keep, -1e9 masked (128-elem compare+select).
    mask_bias = jnp.where(mask_ref[...] > 0.0, 0.0, NEG_INF)    # (B, S, S)

    scale = 1.0 / math.sqrt(DK)

    # ---- per-head attention, batched over the batch dim ---------------------
    # The output projection is folded into the loop and accumulated straight
    # into the sublayer-1 residual: x + attn_out = x + b_o + sum_h ctx_h @ Wo_h.
    resid1 = x + b_o                      # (B*S, D) accumulator
    for h in range(H):                    # static unroll, H = 4
        sl = slice(h * DK, (h + 1) * DK)
        qh, kh, vh = q[:, :, sl], k[:, :, sl], v[:, :, sl]      # (B, S, DK)
        s = jnp.einsum('bqd,bkd->bqk', qh, kh,
                       preferred_element_type=jnp.float32) * scale + mask_bias
        m = jnp.max(s, axis=-1, keepdims=True)
        p = jnp.exp(s - m)
        p = p * pl.reciprocal(jnp.sum(p, axis=-1, keepdims=True), approx=False)
        ctx_h = jnp.einsum('bqk,bkd->bqd', p, vh,
                           preferred_element_type=jnp.float32)  # (B, S, DK)
        resid1 = resid1 + jnp.dot(ctx_h.reshape(B * S, DK), w_o[sl, :],
                                  preferred_element_type=jnp.float32)

    # ---- sublayer 1: residual + LayerNorm (dropout = identity) --------------
    first_x = _torch_layernorm(resid1, g1, be1)

    # ---- feed forward --------------------------------------------------------
    h1 = jnp.maximum(
        jnp.dot(first_x, w_1, preferred_element_type=jnp.float32) + b_1, 0.0)
    ff = jnp.dot(h1, w2_ref[...], preferred_element_type=jnp.float32) + b_2

    # ---- sublayer 2: residual + LayerNorm ------------------------------------
    out_ref[...] = _torch_layernorm(first_x + ff, g2, be2)


def pack_params(params):
    """One-time packing at parameter-setup time (NOT per forward call)."""
    (wq, bq, wk, bk, wv, bv, wo, bo,
     g1, be1, w1, b1, w2, b2, g2, be2) = params

    w_qkv = jnp.concatenate([wq, wk, wv], axis=1)               # (D, 3D)
    wm = jnp.concatenate([w_qkv, wo, w1], axis=1)               # (D, 3D+D+F)
    b_qkv = jnp.concatenate([bq, bk, bv], axis=1)               # (1, 3D)

    # Pack all ten tiny vectors into one (8, 128) f32 tile.
    vecs = jnp.zeros((8, 128), jnp.float32)
    vecs = vecs.at[0, 0:3 * D].set(b_qkv[0])
    vecs = vecs.at[1, 0:D].set(bo[0])
    vecs = vecs.at[2, 0:D].set(g1[0])
    vecs = vecs.at[3, 0:D].set(be1[0])
    vecs = vecs.at[4, 0:F].set(b1[0])
    vecs = vecs.at[5, 0:D].set(b2[0])
    vecs = vecs.at[6, 0:D].set(g2[0])
    vecs = vecs.at[7, 0:D].set(be2[0])
    return wm, w2, vecs


@jax.jit
def encoder_layer(x, mask, packed):
    """Jitted forward: reshape -> single fused pallas_call -> reshape."""
    wm, w2, vecs = packed
    x2d = x.reshape(B * S, D)
    vmem = pltpu.MemorySpace.VMEM
    out2d = pl.pallas_call(
        encoder_layer_kernel,
        out_shape=jax.ShapeDtypeStruct((B * S, D), jnp.float32),
        in_specs=[pl.BlockSpec(memory_space=vmem)] * 5,
        out_specs=pl.BlockSpec(memory_space=vmem),
    )(x2d, mask, wm, w2, vecs)
    return out2d.reshape(B, S, D)


def _reference(x, mask, params):
    """Pure-JAX reference (unfused weights), same math, for a sanity check."""
    (wq, bq, wk, bk, wv, bv, wo, bo,
     g1, be1, w1, b1, w2, b2, g2, be2) = params

    def ln(y, g, bb):
        mean = jnp.mean(y, axis=-1, keepdims=True)
        var = jnp.sum((y - mean) ** 2, axis=-1, keepdims=True) / (D - 1)
        return g * (y - mean) / (jnp.sqrt(var) + EPS) + bb

    q = x @ wq + bq
    k = x @ wk + bk
    v = x @ wv + bv
    qh = q.reshape(B, S, H, DK).transpose(0, 2, 1, 3)
    kh = k.reshape(B, S, H, DK).transpose(0, 2, 1, 3)
    vh = v.reshape(B, S, H, DK).transpose(0, 2, 1, 3)
    sc = jnp.einsum("bhqd,bhkd->bhqk", qh, kh) / math.sqrt(DK)
    sc = jnp.where(mask[:, None, :, :] > 0.0, sc, NEG_INF)
    p = jax.nn.softmax(sc, axis=-1)
    ctx = jnp.einsum("bhqk,bhkd->bhqd", p, vh).transpose(0, 2, 1, 3).reshape(B, S, D)
    attn_out = ctx @ wo + bo
    first_x = ln(x + attn_out, g1, be1)
    ff = jnp.maximum(first_x @ w1 + b1, 0.0) @ w2 + b2
    return ln(first_x + ff, g2, be2)


def make_params(key):
    ks = jax.random.split(key, 16)
    init = lambda k, shape, s=0.02: (s * jax.random.normal(k, shape)).astype(jnp.float32)
    wq = init(ks[0], (D, D)); bq = init(ks[1], (1, D))
    wk = init(ks[2], (D, D)); bk = init(ks[3], (1, D))
    wv = init(ks[4], (D, D)); bv = init(ks[5], (1, D))
    wo = init(ks[6], (D, D)); bo = init(ks[7], (1, D))
    g1 = 1.0 + init(ks[8], (1, D)); be1 = init(ks[9], (1, D))
    w1 = init(ks[10], (D, F)); b1 = init(ks[11], (1, F))
    w2 = init(ks[12], (F, D)); b2 = init(ks[13], (1, D))
    g2 = 1.0 + init(ks[14], (1, D)); be2 = init(ks[15], (1, D))
    return (wq, bq, wk, bk, wv, bv, wo, bo, g1, be1, w1, b1, w2, b2, g2, be2)


if __name__ == "__main__":
    key = jax.random.PRNGKey(0)
    kx, kp = jax.random.split(key)
    x = jax.random.normal(kx, (B, S, D), dtype=jnp.float32)
    # batch 0: full attention; batch 1: causal mask (no fully-masked rows).
    mask = jnp.stack(
        [jnp.ones((S, S), jnp.float32), jnp.tril(jnp.ones((S, S), jnp.float32))],
        axis=0)
    params = make_params(kp)

    # One-time weight packing (setup time), then jitted forward.
    packed = jax.tree_util.tree_map(jax.block_until_ready, pack_params(params))
    out = jax.block_until_ready(encoder_layer(x, mask, packed))

    ref = _reference(x, mask, params)
    assert out.shape == (B, S, D)
    assert jnp.allclose(out, ref, atol=1e-4, rtol=1e-4), "mismatch vs reference"
    print("KERNEL_OK")
</pallas_src>

<mosaic_0001>
module attributes {stable_mosaic.version = 11 : i64} {
  func.func @encoder_layer_kernel(%arg0: memref<16x32xf32, #tpu.memory_space<vmem>>, %arg1: memref<2x8x8xf32, #tpu.memory_space<vmem>>, %arg2: memref<32x192xf32, #tpu.memory_space<vmem>>, %arg3: memref<64x32xf32, #tpu.memory_space<vmem>>, %arg4: memref<8x128xf32, #tpu.memory_space<vmem>>, %arg5: memref<16x32xf32, #tpu.memory_space<vmem>>) attributes {dimension_semantics = [], scalar_prefetch = 0 : i64, scratch_operands = 0 : i64, tpu.core_type = #tpu.core_type<tc>} {
    %c0 = arith.constant 0 : index
    %c0_0 = arith.constant 0 : index
    %0 = vector.load %arg0[%c0, %c0_0] : memref<16x32xf32, #tpu.memory_space<vmem>>, vector<16x32xf32>
    %c0_1 = arith.constant 0 : index
    %c0_2 = arith.constant 0 : index
    %1 = vector.load %arg2[%c0_1, %c0_2] : memref<32x192xf32, #tpu.memory_space<vmem>>, vector<32x192xf32>
    %c0_3 = arith.constant 0 : index
    %c0_4 = arith.constant 0 : index
    %2 = vector.load %arg4[%c0_3, %c0_4] : memref<8x128xf32, #tpu.memory_space<vmem>>, vector<8x128xf32>
    %3 = vector.extract_strided_slice %1 {offsets = [0, 0], sizes = [32, 96], strides = [1, 1]} : vector<32x192xf32> to vector<32x96xf32>
    %4 = vector.extract_strided_slice %1 {offsets = [0, 96], sizes = [32, 32], strides = [1, 1]} : vector<32x192xf32> to vector<32x32xf32>
    %5 = vector.extract_strided_slice %1 {offsets = [0, 128], sizes = [32, 64], strides = [1, 1]} : vector<32x192xf32> to vector<32x64xf32>
    %6 = vector.extract_strided_slice %2 {offsets = [0, 0], sizes = [1, 96], strides = [1, 1]} : vector<8x128xf32> to vector<1x96xf32>
    %7 = vector.extract_strided_slice %2 {offsets = [1, 0], sizes = [1, 32], strides = [1, 1]} : vector<8x128xf32> to vector<1x32xf32>
    %8 = vector.extract_strided_slice %2 {offsets = [2, 0], sizes = [1, 32], strides = [1, 1]} : vector<8x128xf32> to vector<1x32xf32>
    %9 = vector.extract_strided_slice %2 {offsets = [3, 0], sizes = [1, 32], strides = [1, 1]} : vector<8x128xf32> to vector<1x32xf32>
    %10 = vector.extract_strided_slice %2 {offsets = [4, 0], sizes = [1, 64], strides = [1, 1]} : vector<8x128xf32> to vector<1x64xf32>
    %11 = vector.extract_strided_slice %2 {offsets = [5, 0], sizes = [1, 32], strides = [1, 1]} : vector<8x128xf32> to vector<1x32xf32>
    %12 = vector.extract_strided_slice %2 {offsets = [6, 0], sizes = [1, 32], strides = [1, 1]} : vector<8x128xf32> to vector<1x32xf32>
    %13 = vector.extract_strided_slice %2 {offsets = [7, 0], sizes = [1, 32], strides = [1, 1]} : vector<8x128xf32> to vector<1x32xf32>
    %cst = arith.constant dense<0.000000e+00> : vector<16x96xf32>
    %14 = tpu.matmul %0, %3, %cst {dimension_numbers = #tpu.dot_dimension_numbers<[1], [0], [0], [1], [0, 0, 1, 1], [], []>} : vector<16x32xf32>, vector<32x96xf32>, vector<16x96xf32> -> vector<16x96xf32>
    %15 = vector.broadcast %6 : vector<1x96xf32> to vector<16x96xf32>
    %16 = arith.addf %14, %15 : vector<16x96xf32>
    %17 = vector.extract_strided_slice %16 {offsets = [0, 0], sizes = [16, 32], strides = [1, 1]} : vector<16x96xf32> to vector<16x32xf32>
    %18 = vector.shape_cast %17 : vector<16x32xf32> to vector<2x8x32xf32>
    %19 = vector.extract_strided_slice %16 {offsets = [0, 32], sizes = [16, 32], strides = [1, 1]} : vector<16x96xf32> to vector<16x32xf32>
    %20 = vector.shape_cast %19 : vector<16x32xf32> to vector<2x8x32xf32>
    %21 = vector.extract_strided_slice %16 {offsets = [0, 64], sizes = [16, 32], strides = [1, 1]} : vector<16x96xf32> to vector<16x32xf32>
    %22 = vector.shape_cast %21 : vector<16x32xf32> to vector<2x8x32xf32>
    %c0_5 = arith.constant 0 : index
    %c0_6 = arith.constant 0 : index
    %c0_7 = arith.constant 0 : index
    %23 = vector.load %arg1[%c0_5, %c0_6, %c0_7] : memref<2x8x8xf32, #tpu.memory_space<vmem>>, vector<2x8x8xf32>
    %cst_8 = arith.constant 0.000000e+00 : f32
    %24 = vector.broadcast %cst_8 : f32 to vector<2x8x8xf32>
    %25 = arith.cmpf ogt, %23, %24 : vector<2x8x8xf32>
    %cst_9 = arith.constant 0.000000e+00 : f32
    %cst_10 = arith.constant -1.000000e+09 : f32
    %26 = vector.broadcast %cst_9 : f32 to vector<2x8x8xf32>
    %27 = vector.broadcast %cst_10 : f32 to vector<2x8x8xf32>
    %28 = arith.select %25, %26, %27 : vector<2x8x8xi1>, vector<2x8x8xf32>
    %29 = vector.broadcast %7 : vector<1x32xf32> to vector<16x32xf32>
    %30 = arith.addf %0, %29 : vector<16x32xf32>
    %31 = vector.extract_strided_slice %18 {offsets = [0, 0, 0], sizes = [2, 8, 8], strides = [1, 1, 1]} : vector<2x8x32xf32> to vector<2x8x8xf32>
    %32 = vector.extract_strided_slice %20 {offsets = [0, 0, 0], sizes = [2, 8, 8], strides = [1, 1, 1]} : vector<2x8x32xf32> to vector<2x8x8xf32>
    %33 = vector.extract_strided_slice %22 {offsets = [0, 0, 0], sizes = [2, 8, 8], strides = [1, 1, 1]} : vector<2x8x32xf32> to vector<2x8x8xf32>
    "tpu.trace_start"() <{level = 10 : i32, message = "bqd,bkd->bqk"}> : () -> ()
    %cst_11 = arith.constant dense<0.000000e+00> : vector<2x8x8xf32>
    %34 = tpu.matmul %31, %32, %cst_11 {dimension_numbers = #tpu.dot_dimension_numbers<[2], [2], [1], [1], [0, 0, 0, 1, 1, 1], [0], [0]>} : vector<2x8x8xf32>, vector<2x8x8xf32>, vector<2x8x8xf32> -> vector<2x8x8xf32>
    "tpu.trace_stop"() : () -> ()
    %cst_12 = arith.constant 0.353553385 : f32
    %35 = vector.broadcast %cst_12 : f32 to vector<2x8x8xf32>
    %36 = arith.mulf %34, %35 : vector<2x8x8xf32>
    %37 = arith.addf %36, %28 : vector<2x8x8xf32>
    %cst_13 = arith.constant dense<0xFF800000> : vector<2x8xf32>
    %38 = vector.multi_reduction <maximumf>, %37, %cst_13 [2] : vector<2x8x8xf32> to vector<2x8xf32>
    %39 = vector.shape_cast %38 : vector<2x8xf32> to vector<2x8x1xf32>
    %40 = vector.broadcast %39 : vector<2x8x1xf32> to vector<2x8x8xf32>
    %41 = arith.subf %37, %40 : vector<2x8x8xf32>
    %42 = math.exp %41 : vector<2x8x8xf32>
    %cst_14 = arith.constant dense<0.000000e+00> : vector<2x8xf32>
    %43 = vector.multi_reduction <add>, %42, %cst_14 [2] : vector<2x8x8xf32> to vector<2x8xf32>
    %44 = vector.shape_cast %43 : vector<2x8xf32> to vector<2x8x1xf32>
    %45 = tpu.reciprocal %44 : vector<2x8x1xf32> -> vector<2x8x1xf32>
    %46 = vector.broadcast %45 : vector<2x8x1xf32> to vector<2x8x8xf32>
    %47 = arith.mulf %42, %46 : vector<2x8x8xf32>
    "tpu.trace_start"() <{level = 10 : i32, message = "bqk,bkd->bqd"}> : () -> ()
    %cst_15 = arith.constant dense<0.000000e+00> : vector<2x8x8xf32>
    %48 = tpu.matmul %47, %33, %cst_15 {dimension_numbers = #tpu.dot_dimension_numbers<[2], [1], [1], [2], [0, 0, 0, 1, 1, 2], [0], [0]>} : vector<2x8x8xf32>, vector<2x8x8xf32>, vector<2x8x8xf32> -> vector<2x8x8xf32>
    "tpu.trace_stop"() : () -> ()
    %49 = vector.shape_cast %48 : vector<2x8x8xf32> to vector<16x8xf32>
    %50 = vector.extract_strided_slice %4 {offsets = [0, 0], sizes = [8, 32], strides = [1, 1]} : vector<32x32xf32> to vector<8x32xf32>
    %cst_16 = arith.constant dense<0.000000e+00> : vector<16x32xf32>
    %51 = tpu.matmul %49, %50, %cst_16 {dimension_numbers = #tpu.dot_dimension_numbers<[1], [0], [0], [1], [0, 0, 1, 1], [], []>} : vector<16x8xf32>, vector<8x32xf32>, vector<16x32xf32> -> vector<16x32xf32>
    %52 = arith.addf %30, %51 : vector<16x32xf32>
    %53 = vector.extract_strided_slice %18 {offsets = [0, 0, 8], sizes = [2, 8, 8], strides = [1, 1, 1]} : vector<2x8x32xf32> to vector<2x8x8xf32>
    %54 = vector.extract_strided_slice %20 {offsets = [0, 0, 8], sizes = [2, 8, 8], strides = [1, 1, 1]} : vector<2x8x32xf32> to vector<2x8x8xf32>
    %55 = vector.extract_strided_slice %22 {offsets = [0, 0, 8], sizes = [2, 8, 8], strides = [1, 1, 1]} : vector<2x8x32xf32> to vector<2x8x8xf32>
    "tpu.trace_start"() <{level = 10 : i32, message = "bqd,bkd->bqk"}> : () -> ()
    %cst_17 = arith.constant dense<0.000000e+00> : vector<2x8x8xf32>
    %56 = tpu.matmul %53, %54, %cst_17 {dimension_numbers = #tpu.dot_dimension_numbers<[2], [2], [1], [1], [0, 0, 0, 1, 1, 1], [0], [0]>} : vector<2x8x8xf32>, vector<2x8x8xf32>, vector<2x8x8xf32> -> vector<2x8x8xf32>
    "tpu.trace_stop"() : () -> ()
    %cst_18 = arith.constant 0.353553385 : f32
    %57 = vector.broadcast %cst_18 : f32 to vector<2x8x8xf32>
    %58 = arith.mulf %56, %57 : vector<2x8x8xf32>
    %59 = arith.addf %58, %28 : vector<2x8x8xf32>
    %cst_19 = arith.constant dense<0xFF800000> : vector<2x8xf32>
    %60 = vector.multi_reduction <maximumf>, %59, %cst_19 [2] : vector<2x8x8xf32> to vector<2x8xf32>
    %61 = vector.shape_cast %60 : vector<2x8xf32> to vector<2x8x1xf32>
    %62 = vector.broadcast %61 : vector<2x8x1xf32> to vector<2x8x8xf32>
    %63 = arith.subf %59, %62 : vector<2x8x8xf32>
    %64 = math.exp %63 : vector<2x8x8xf32>
    %cst_20 = arith.constant dense<0.000000e+00> : vector<2x8xf32>
    %65 = vector.multi_reduction <add>, %64, %cst_20 [2] : vector<2x8x8xf32> to vector<2x8xf32>
    %66 = vector.shape_cast %65 : vector<2x8xf32> to vector<2x8x1xf32>
    %67 = tpu.reciprocal %66 : vector<2x8x1xf32> -> vector<2x8x1xf32>
    %68 = vector.broadcast %67 : vector<2x8x1xf32> to vector<2x8x8xf32>
    %69 = arith.mulf %64, %68 : vector<2x8x8xf32>
    "tpu.trace_start"() <{level = 10 : i32, message = "bqk,bkd->bqd"}> : () -> ()
    %cst_21 = arith.constant dense<0.000000e+00> : vector<2x8x8xf32>
    %70 = tpu.matmul %69, %55, %cst_21 {dimension_numbers = #tpu.dot_dimension_numbers<[2], [1], [1], [2], [0, 0, 0, 1, 1, 2], [0], [0]>} : vector<2x8x8xf32>, vector<2x8x8xf32>, vector<2x8x8xf32> -> vector<2x8x8xf32>
    "tpu.trace_stop"() : () -> ()
    %71 = vector.shape_cast %70 : vector<2x8x8xf32> to vector<16x8xf32>
    %72 = vector.extract_strided_slice %4 {offsets = [8, 0], sizes = [8, 32], strides = [1, 1]} : vector<32x32xf32> to vector<8x32xf32>
    %cst_22 = arith.constant dense<0.000000e+00> : vector<16x32xf32>
    %73 = tpu.matmul %71, %72, %cst_22 {dimension_numbers = #tpu.dot_dimension_numbers<[1], [0], [0], [1], [0, 0, 1, 1], [], []>} : vector<16x8xf32>, vector<8x32xf32>, vector<16x32xf32> -> vector<16x32xf32>
    %74 = arith.addf %52, %73 : vector<16x32xf32>
    %75 = vector.extract_strided_slice %18 {offsets = [0, 0, 16], sizes = [2, 8, 8], strides = [1, 1, 1]} : vector<2x8x32xf32> to vector<2x8x8xf32>
    %76 = vector.extract_strided_slice %20 {offsets = [0, 0, 16], sizes = [2, 8, 8], strides = [1, 1, 1]} : vector<2x8x32xf32> to vector<2x8x8xf32>
    %77 = vector.extract_strided_slice %22 {offsets = [0, 0, 16], sizes = [2, 8, 8], strides = [1, 1, 1]} : vector<2x8x32xf32> to vector<2x8x8xf32>
    "tpu.trace_start"() <{level = 10 : i32, message = "bqd,bkd->bqk"}> : () -> ()
    %cst_23 = arith.constant dense<0.000000e+00> : vector<2x8x8xf32>
    %78 = tpu.matmul %75, %76, %cst_23 {dimension_numbers = #tpu.dot_dimension_numbers<[2], [2], [1], [1], [0, 0, 0, 1, 1, 1], [0], [0]>} : vector<2x8x8xf32>, vector<2x8x8xf32>, vector<2x8x8xf32> -> vector<2x8x8xf32>
    "tpu.trace_stop"() : () -> ()
    %cst_24 = arith.constant 0.353553385 : f32
    %79 = vector.broadcast %cst_24 : f32 to vector<2x8x8xf32>
    %80 = arith.mulf %78, %79 : vector<2x8x8xf32>
    %81 = arith.addf %80, %28 : vector<2x8x8xf32>
    %cst_25 = arith.constant dense<0xFF800000> : vector<2x8xf32>
    %82 = vector.multi_reduction <maximumf>, %81, %cst_25 [2] : vector<2x8x8xf32> to vector<2x8xf32>
    %83 = vector.shape_cast %82 : vector<2x8xf32> to vector<2x8x1xf32>
    %84 = vector.broadcast %83 : vector<2x8x1xf32> to vector<2x8x8xf32>
    %85 = arith.subf %81, %84 : vector<2x8x8xf32>
    %86 = math.exp %85 : vector<2x8x8xf32>
    %cst_26 = arith.constant dense<0.000000e+00> : vector<2x8xf32>
    %87 = vector.multi_reduction <add>, %86, %cst_26 [2] : vector<2x8x8xf32> to vector<2x8xf32>
    %88 = vector.shape_cast %87 : vector<2x8xf32> to vector<2x8x1xf32>
    %89 = tpu.reciprocal %88 : vector<2x8x1xf32> -> vector<2x8x1xf32>
    %90 = vector.broadcast %89 : vector<2x8x1xf32> to vector<2x8x8xf32>
    %91 = arith.mulf %86, %90 : vector<2x8x8xf32>
    "tpu.trace_start"() <{level = 10 : i32, message = "bqk,bkd->bqd"}> : () -> ()
    %cst_27 = arith.constant dense<0.000000e+00> : vector<2x8x8xf32>
    %92 = tpu.matmul %91, %77, %cst_27 {dimension_numbers = #tpu.dot_dimension_numbers<[2], [1], [1], [2], [0, 0, 0, 1, 1, 2], [0], [0]>} : vector<2x8x8xf32>, vector<2x8x8xf32>, vector<2x8x8xf32> -> vector<2x8x8xf32>
    "tpu.trace_stop"() : () -> ()
    %93 = vector.shape_cast %92 : vector<2x8x8xf32> to vector<16x8xf32>
    %94 = vector.extract_strided_slice %4 {offsets = [16, 0], sizes = [8, 32], strides = [1, 1]} : vector<32x32xf32> to vector<8x32xf32>
    %cst_28 = arith.constant dense<0.000000e+00> : vector<16x32xf32>
    %95 = tpu.matmul %93, %94, %cst_28 {dimension_numbers = #tpu.dot_dimension_numbers<[1], [0], [0], [1], [0, 0, 1, 1], [], []>} : vector<16x8xf32>, vector<8x32xf32>, vector<16x32xf32> -> vector<16x32xf32>
    %96 = arith.addf %74, %95 : vector<16x32xf32>
    %97 = vector.extract_strided_slice %18 {offsets = [0, 0, 24], sizes = [2, 8, 8], strides = [1, 1, 1]} : vector<2x8x32xf32> to vector<2x8x8xf32>
    %98 = vector.extract_strided_slice %20 {offsets = [0, 0, 24], sizes = [2, 8, 8], strides = [1, 1, 1]} : vector<2x8x32xf32> to vector<2x8x8xf32>
    %99 = vector.extract_strided_slice %22 {offsets = [0, 0, 24], sizes = [2, 8, 8], strides = [1, 1, 1]} : vector<2x8x32xf32> to vector<2x8x8xf32>
    "tpu.trace_start"() <{level = 10 : i32, message = "bqd,bkd->bqk"}> : () -> ()
    %cst_29 = arith.constant dense<0.000000e+00> : vector<2x8x8xf32>
    %100 = tpu.matmul %97, %98, %cst_29 {dimension_numbers = #tpu.dot_dimension_numbers<[2], [2], [1], [1], [0, 0, 0, 1, 1, 1], [0], [0]>} : vector<2x8x8xf32>, vector<2x8x8xf32>, vector<2x8x8xf32> -> vector<2x8x8xf32>
    "tpu.trace_stop"() : () -> ()
    %cst_30 = arith.constant 0.353553385 : f32
    %101 = vector.broadcast %cst_30 : f32 to vector<2x8x8xf32>
    %102 = arith.mulf %100, %101 : vector<2x8x8xf32>
    %103 = arith.addf %102, %28 : vector<2x8x8xf32>
    %cst_31 = arith.constant dense<0xFF800000> : vector<2x8xf32>
    %104 = vector.multi_reduction <maximumf>, %103, %cst_31 [2] : vector<2x8x8xf32> to vector<2x8xf32>
    %105 = vector.shape_cast %104 : vector<2x8xf32> to vector<2x8x1xf32>
    %106 = vector.broadcast %105 : vector<2x8x1xf32> to vector<2x8x8xf32>
    %107 = arith.subf %103, %106 : vector<2x8x8xf32>
    %108 = math.exp %107 : vector<2x8x8xf32>
    %cst_32 = arith.constant dense<0.000000e+00> : vector<2x8xf32>
    %109 = vector.multi_reduction <add>, %108, %cst_32 [2] : vector<2x8x8xf32> to vector<2x8xf32>
    %110 = vector.shape_cast %109 : vector<2x8xf32> to vector<2x8x1xf32>
    %111 = tpu.reciprocal %110 : vector<2x8x1xf32> -> vector<2x8x1xf32>
    %112 = vector.broadcast %111 : vector<2x8x1xf32> to vector<2x8x8xf32>
    %113 = arith.mulf %108, %112 : vector<2x8x8xf32>
    "tpu.trace_start"() <{level = 10 : i32, message = "bqk,bkd->bqd"}> : () -> ()
    %cst_33 = arith.constant dense<0.000000e+00> : vector<2x8x8xf32>
    %114 = tpu.matmul %113, %99, %cst_33 {dimension_numbers = #tpu.dot_dimension_numbers<[2], [1], [1], [2], [0, 0, 0, 1, 1, 2], [0], [0]>} : vector<2x8x8xf32>, vector<2x8x8xf32>, vector<2x8x8xf32> -> vector<2x8x8xf32>
    "tpu.trace_stop"() : () -> ()
    %115 = vector.shape_cast %114 : vector<2x8x8xf32> to vector<16x8xf32>
    %116 = vector.extract_strided_slice %4 {offsets = [24, 0], sizes = [8, 32], strides = [1, 1]} : vector<32x32xf32> to vector<8x32xf32>
    %cst_34 = arith.constant dense<0.000000e+00> : vector<16x32xf32>
    %117 = tpu.matmul %115, %116, %cst_34 {dimension_numbers = #tpu.dot_dimension_numbers<[1], [0], [0], [1], [0, 0, 1, 1], [], []>} : vector<16x8xf32>, vector<8x32xf32>, vector<16x32xf32> -> vector<16x32xf32>
    %118 = arith.addf %96, %117 : vector<16x32xf32>
    %cst_35 = arith.constant dense<0.000000e+00> : vector<16xf32>
    %119 = vector.multi_reduction <add>, %118, %cst_35 [1] : vector<16x32xf32> to vector<16xf32>
    %120 = vector.shape_cast %119 : vector<16xf32> to vector<16x1xf32>
    %cst_36 = arith.constant 3.125000e-02 : f32
    %121 = vector.broadcast %cst_36 : f32 to vector<16x1xf32>
    %122 = arith.mulf %120, %121 : vector<16x1xf32>
    %123 = vector.broadcast %122 : vector<16x1xf32> to vector<16x32xf32>
    %124 = arith.subf %118, %123 : vector<16x32xf32>
    %125 = arith.mulf %124, %124 : vector<16x32xf32>
    %cst_37 = arith.constant dense<0.000000e+00> : vector<16xf32>
    %126 = vector.multi_reduction <add>, %125, %cst_37 [1] : vector<16x32xf32> to vector<16xf32>
    %127 = vector.shape_cast %126 : vector<16xf32> to vector<16x1xf32>
    %cst_38 = arith.constant 0.0322580636 : f32
    %128 = vector.broadcast %cst_38 : f32 to vector<16x1xf32>
    %129 = arith.mulf %127, %128 : vector<16x1xf32>
    %130 = math.sqrt %129 : vector<16x1xf32>
    %cst_39 = arith.constant 9.99999997E-7 : f32
    %131 = vector.broadcast %cst_39 : f32 to vector<16x1xf32>
    %132 = arith.addf %130, %131 : vector<16x1xf32>
    %133 = tpu.reciprocal %132 : vector<16x1xf32> -> vector<16x1xf32>
    %134 = vector.broadcast %122 : vector<16x1xf32> to vector<16x32xf32>
    %135 = arith.subf %118, %134 : vector<16x32xf32>
    %136 = vector.broadcast %8 : vector<1x32xf32> to vector<16x32xf32>
    %137 = arith.mulf %136, %135 : vector<16x32xf32>
    %138 = vector.broadcast %133 : vector<16x1xf32> to vector<16x32xf32>
    %139 = arith.mulf %137, %138 : vector<16x32xf32>
    %140 = vector.broadcast %9 : vector<1x32xf32> to vector<16x32xf32>
    %141 = arith.addf %139, %140 : vector<16x32xf32>
    %cst_40 = arith.constant dense<0.000000e+00> : vector<16x64xf32>
    %142 = tpu.matmul %141, %5, %cst_40 {dimension_numbers = #tpu.dot_dimension_numbers<[1], [0], [0], [1], [0, 0, 1, 1], [], []>} : vector<16x32xf32>, vector<32x64xf32>, vector<16x64xf32> -> vector<16x64xf32>
    %143 = vector.broadcast %10 : vector<1x64xf32> to vector<16x64xf32>
    %144 = arith.addf %142, %143 : vector<16x64xf32>
    %cst_41 = arith.constant 0.000000e+00 : f32
    %145 = vector.broadcast %cst_41 : f32 to vector<16x64xf32>
    %146 = arith.maximumf %144, %145 : vector<16x64xf32>
    %c0_42 = arith.constant 0 : index
    %c0_43 = arith.constant 0 : index
    %147 = vector.load %arg3[%c0_42, %c0_43] : memref<64x32xf32, #tpu.memory_space<vmem>>, vector<64x32xf32>
    %cst_44 = arith.constant dense<0.000000e+00> : vector<16x32xf32>
    %148 = tpu.matmul %146, %147, %cst_44 {dimension_numbers = #tpu.dot_dimension_numbers<[1], [0], [0], [1], [0, 0, 1, 1], [], []>} : vector<16x64xf32>, vector<64x32xf32>, vector<16x32xf32> -> vector<16x32xf32>
    %149 = vector.broadcast %11 : vector<1x32xf32> to vector<16x32xf32>
    %150 = arith.addf %148, %149 : vector<16x32xf32>
    %151 = arith.addf %141, %150 : vector<16x32xf32>
    %cst_45 = arith.constant dense<0.000000e+00> : vector<16xf32>
    %152 = vector.multi_reduction <add>, %151, %cst_45 [1] : vector<16x32xf32> to vector<16xf32>
    %153 = vector.shape_cast %152 : vector<16xf32> to vector<16x1xf32>
    %cst_46 = arith.constant 3.125000e-02 : f32
    %154 = vector.broadcast %cst_46 : f32 to vector<16x1xf32>
    %155 = arith.mulf %153, %154 : vector<16x1xf32>
    %156 = vector.broadcast %155 : vector<16x1xf32> to vector<16x32xf32>
    %157 = arith.subf %151, %156 : vector<16x32xf32>
    %158 = arith.mulf %157, %157 : vector<16x32xf32>
    %cst_47 = arith.constant dense<0.000000e+00> : vector<16xf32>
    %159 = vector.multi_reduction <add>, %158, %cst_47 [1] : vector<16x32xf32> to vector<16xf32>
    %160 = vector.shape_cast %159 : vector<16xf32> to vector<16x1xf32>
    %cst_48 = arith.constant 0.0322580636 : f32
    %161 = vector.broadcast %cst_48 : f32 to vector<16x1xf32>
    %162 = arith.mulf %160, %161 : vector<16x1xf32>
    %163 = math.sqrt %162 : vector<16x1xf32>
    %cst_49 = arith.constant 9.99999997E-7 : f32
    %164 = vector.broadcast %cst_49 : f32 to vector<16x1xf32>
    %165 = arith.addf %163, %164 : vector<16x1xf32>
    %166 = tpu.reciprocal %165 : vector<16x1xf32> -> vector<16x1xf32>
    %167 = vector.broadcast %155 : vector<16x1xf32> to vector<16x32xf32>
    %168 = arith.subf %151, %167 : vector<16x32xf32>
    %169 = vector.broadcast %12 : vector<1x32xf32> to vector<16x32xf32>
    %170 = arith.mulf %169, %168 : vector<16x32xf32>
    %171 = vector.broadcast %166 : vector<16x1xf32> to vector<16x32xf32>
    %172 = arith.mulf %170, %171 : vector<16x32xf32>
    %173 = vector.broadcast %13 : vector<1x32xf32> to vector<16x32xf32>
    %174 = arith.addf %172, %173 : vector<16x32xf32>
    %c0_50 = arith.constant 0 : index
    %c0_51 = arith.constant 0 : index
    %175 = vector.load %arg5[%c0_50, %c0_51] : memref<16x32xf32, #tpu.memory_space<vmem>>, vector<16x32xf32>
    tpu.vector_store %arg5[%c0_50, %c0_51], %174 {strides = array<i32>} : memref<16x32xf32, #tpu.memory_space<vmem>>, vector<16x32xf32>,
    return
  }
}

</mosaic_0001>

<bundles_post_ra>
// kernel: encoder_layer.1
= control target key start
LH: loop header
LB: loop body
LE: loop exit
PB: predicated region body
PF: predicated region fallthrough
CT: control target
= control target key end

     0   :  { %vm36_vm0 = vcmask 261120   ;;  %s2821_s0 = inlined_call_operand.vmem [shape: f32[16,32], index: 0, kind: input, shape index: {}]   ;;  %s2822_s1 = inlined_call_operand.vmem [shape: f32[2,8,8], index: 1, kind: input, shape index: {}]   ;;  %s2823_s2 = inlined_call_operand.vmem [shape: f32[32,192], index: 2, kind: input, shape index: {}]   ;;  %s2824_s3 = inlined_call_operand.vmem [shape: f32[64,32], index: 3, kind: input, shape index: {}]   ;;  %s2825_s4 = inlined_call_operand.vmem [shape: f32[8,128], index: 4, kind: input, shape index: {}]   ;;  %s2826_s5 = inlined_call_operand.hbm [shape: f32[16,32], index: 5, kind: output, shape index: {}]  }
   0x1   :  { %v2544_v0 = vld [vmem:[%s2823_s2] sm:$0xff]  ;;  %v2549_v1 = vld [vmem:[%s2823_s2 + $0x10] sm:$0xff] }
   0x2   :  { %v2554_v2 = vld [vmem:[%s2823_s2 + $0x20] sm:$0xff]  ;;  %v2363_v3 = vpack.c.bf16 %v2549_v1, %v2544_v0  ;;  %v2561_v4 = vld [vmem:[%s2823_s2 + $0x30] sm:$0xff] }
   0x3   :  { %v2566_v5 = vld [vmem:[%s2821_s0] sm:$0xff]  ;;  %v2367_v6 = vpack.c.bf16 %v2561_v4, %v2554_v2 }
   0x4   :  { %2230 = vmatprep.mubr.msk.f32.mxu1 %vm36_vm0, %v2566_v5 }
   0x5   :  { %10 = vsyncpa [#allocation3], 0  ;;  %2364 = vmatprep.subr.bf16.mxu1 %v2363_v3  ;;  %v2575_v7 = vld [vmem:[%s2821_s0 + $0x8] sm:$0xff]  ;;  %v2493_v8 = vmov 0.0   ;;  %v32_v9 = vlaneseq  ;;  %vm2494_vm1 = vmmov 0   ;;  %v2591_v12 = vld [vmem:[%s2825_s4] sm:$0xff] }
   0x6   :  { %2366 = vmatpush3.bf16.msra.mxu1 %v2363_v3  ;;  %2243 = vmatprep.subr.mxu0 %v2493_v8  ;;  %s2495_s6 = smov 96   ;;  %vm133_vm2 = vcmask 64512   ;;  %v118_v20 = vld [vmem:[%s2822_s1] sm:$0xff]  ;;  %v119_v21 = vld [vmem:[%s2822_s1 + $0x8] sm:$0xff]  ;;  %v2496_v23 = vmov -1e+09  }
   0x7   :  { %2368 = vmatprep.subr.bf16.mxu1 %v2367_v6  ;;  %v2581_v10 = vshrl.u32 %v32_v9, 7  ;;  %2245 = vmatprep.mubr.msk.f32.mxu0 %vm2494_vm1, %v2493_v8  ;;  %vm120_vm3 = vcmp.gt.f32.partialorder %v118_v20, 0.0  ;;  %vm121_vm4 = vcmp.gt.f32.partialorder %v119_v21, 0.0  ;;  %s2497_s1 = smov 64   ;;  %s2498_s10 = smov 88   ;;  %vm1964_vm9 = vcmask 523264  }
   0x8   :  { %v2618_v24 = vsel %vm120_vm3, 0.0, %v2496_v23  ;;  %v2621_v29 = vsel %vm121_vm4, 0.0, %v2496_v23  ;;  %s2499_s11 = smov 120   ;;  %s2500_s12 = smov 32  }
   0x9   :  { %v34_v11 = vsub.s32 0, %v2581_v10  ;;  %s2501_s13 = smov 56   ;;  %s2502_s14 = smov 112  }
   0xa   :  { %2370 = vmatpush3.bf16.msra.mxu1 %v2367_v6  ;;  %s2503_s15 = smov 80   ;;  %s2504_s16 = smov 48  }
   0xb   :  { %2233 = vmatprep.subr.mxu1 %v2493_v8  ;;  %v35_v13 = vrot.slane %v2591_v12, %v34_v11  ;;  %s2505_s17 = smov 72   ;;  %s2506_s18 = smov 104  }
   0xc   :  { %s2507_s19 = smov 40  }
   0xd   :  { %2231 = vmatmul.mubr.msk.f32.vlgmr.msra.gmra.mrb[0].mxu1 %vm36_vm0, %v2575_v7 }
   0xe   :  { %2235 = vmatprep.mubr.msk.f32.mxu1 %vm2494_vm1, %v2493_v8 }
  0xe0   :  { %v2232_v14 = vpop.f32.mrb[0].mxu1 }
  0xe1   :  { %v109_v15 = vpop.f32.mrb[1].mxu1  ;;  %v2597_v17 = vadd.f32 %v2232_v14, %v35_v13 }
  0xe2   :  { %v2594_v16 = vadd.f32 %v109_v15, %v35_v13 }
  0xe4   :  { %131 = vrot.lane.b32.xlu0 %v2594_v16, %s2495_s6 }
  0xe8   :  { %209 = vrot.lane.b32.xlu0 %v2597_v17, %s2495_s6 }
 0x156   :  { %v132_v18 = vpop.permute.xlu0 %131 }
 0x157   :  { %2234 = vmatpush3.xpose.msk.msra.mxu1 %vm133_vm2, %v132_v18 }
 0x158   :  { %2238 = vmatprep.subr.mxu1 %v2493_v8 }
 0x15a   :  { %2236 = vmatmul.mubr.msk.f32.vlgmr.msra.gmra.mrb[2].mxu1 %vm133_vm2, %v2594_v16  ;;  %v210_v19 = vpop.permute.xlu0 %209 }
 0x15b   :  { %2239 = vmatpush3.xpose.msk.msra.mxu1 %vm133_vm2, %v210_v19  ;;  %2240 = vmatprep.mubr.msk.f32.mxu1 %vm2494_vm1, %v2493_v8 }
 0x15c   :  { %2248 = vmatprep.subr.mxu1 %v2493_v8 }
 0x15e   :  { %2241 = vmatmul.mubr.msk.f32.vlgmr.msra.gmra.mrb[4].mxu1 %vm133_vm2, %v2597_v17 }
 0x15f   :  { %2250 = vmatprep.mubr.msk.f32.mxu1 %vm2494_vm1, %v2493_v8 }
 0x22d   :  { %v204_v22 = vpop.f32.mrb[2].mxu1 }
 0x22e   :  { %v285_v25 = vmul.f32 0.35355338, %v204_v22  ;;  %v2237_v26 = vpop.f32.mrb[3].mxu1 }
 0x230   :  { %v287_v27 = vadd.f32 %v285_v25, %v2618_v24 }
 0x231   :  { %v281_v28 = vpop.f32.mrb[4].mxu1 }
 0x232   :  { %v286_v30 = vmul.f32 0.35355338, %v281_v28  ;;  %v2242_v31 = vpop.f32.mrb[5].mxu1  ;;  %v289_v32 = vsel %vm133_vm2, %v287_v27, -inf }
 0x233   :  { %290 = vmax.xlane.f32.xlu1 %v289_v32 }
 0x234   :  { %v288_v33 = vadd.f32 %v286_v30, %v2621_v29 }
 0x236   :  { %v292_v34 = vsel %vm133_vm2, %v288_v33, -inf }
 0x237   :  { %293 = vmax.xlane.f32.xlu1 %v292_v34 }
 0x248   :  { %311 = vrot.lane.b32.xlu1 %v2594_v16, %s2497_s1 }
 0x2c0   :  { %v291_v35 = vpop.xlane.xlu1 %290 }
 0x2c1   :  { %v295_v36 = vsub.f32 %v287_v27, %v291_v35 }
 0x2c3   :  { %v297_v37 = vmul.f32 1.442695, %v295_v36 }
 0x2c4   :  { %v294_v38 = vpop.xlane.xlu1 %293 }
 0x2c5   :  { %2421 = vpow2.f32 %v297_v37  ;;  %v296_v39 = vsub.f32 %v288_v33, %v294_v38 }
 0x2c7   :  { %v299_v40 = vmul.f32 1.442695, %v296_v39 }
 0x2c8   :  { %v312_v41 = vpop.permute.xlu1 %311 }
 0x2c9   :  { %2423 = vpow2.f32 %v299_v40  ;;  %2244 = vmatpush3.msra.mxu0 %v312_v41 }
 0x2cf   :  { %v2422_v42 = vpop.eup %2421 }
 0x2d0   :  { %v301_v43 = vsel %vm133_vm2, %v2422_v42, 0.0 }
 0x2d1   :  { %302 = vadd.xlane.f32.xlu0 %v301_v43 }
 0x2d3   :  { %v2424_v44 = vpop.eup %2423 }
 0x2d4   :  { %v304_v45 = vsel %vm133_vm2, %v2424_v44, 0.0 }
 0x2d5   :  { %305 = vadd.xlane.f32.xlu1 %v304_v45 }
 0x2e6   :  { %387 = vrot.lane.b32.xlu1 %v2597_v17, %s2497_s1 }
 0x2e7   :  { %464 = vrot.lane.b32.xlu0 %v2544_v0, %s2500_s12 }
 0x2ea   :  { %552 = vrot.lane.b32.xlu1 %v2594_v16, %s2498_s10 }
 0x2ee   :  { %550 = vrot.lane.b32.xlu1 %v2594_v16, %s2499_s11 }
 0x2f2   :  { %630 = vrot.lane.b32.xlu1 %v2597_v17, %s2498_s10 }
 0x2f6   :  { %628 = vrot.lane.b32.xlu1 %v2597_v17, %s2499_s11 }
 0x35e   :  { %v303_v46 = vpop.xlane.xlu0 %302 }
 0x35f   :  { %2425 = vrcp.f32 %v303_v46 }
 0x362   :  { %v306_v47 = vpop.xlane.xlu1 %305  ;;  %v465_v50 = vpop.permute.xlu0 %464 }
 0x363   :  { %2427 = vrcp.f32 %v306_v47  ;;  %2253 = vmatprep.subr.mxu0 %v465_v50 }
 0x366   :  { %v388_v48 = vpop.permute.xlu1 %387 }
 0x367   :  { %2249 = vmatpush3.msra.mxu1 %v388_v48 }
 0x368   :  { %2258 = vmatprep.subr.mxu1 %v2493_v8 }
 0x369   :  { %v2426_v49 = vpop.eup %2425 }
 0x36a   :  { %v309_v51 = vmul.f32 %v2426_v49, %v2422_v42  ;;  %v553_v53 = vpop.permute.xlu1 %552 }
 0x36c   :  { %2246 = vmatmul.mubr.msk.f32.vlgmr.msra.gmra.mrb[0].mxu0 %vm133_vm2, %v309_v51 }
 0x36d   :  { %v2428_v52 = vpop.eup %2427  ;;  %2254 = vmatpush3.msra.mxu0 %v465_v50 }
 0x36e   :  { %v310_v54 = vmul.f32 %v2428_v52, %v2424_v44  ;;  %2263 = vmatprep.subr.mxu0 %v2493_v8  ;;  %v551_v55 = vpop.permute.xlu1 %550 }
 0x370   :  { %2251 = vmatmul.mubr.msk.f32.vlgmr.msra.gmra.mrb[6].mxu1 %vm133_vm2, %v310_v54 }
 0x371   :  { %2259 = vmatpush3.xpose.msk.msra.mxu1 %vm133_vm2, %v553_v53  ;;  %2260 = vmatprep.mubr.msk.f32.mxu1 %vm2494_vm1, %v2493_v8 }
 0x372   :  { %2268 = vmatprep.subr.mxu1 %v2493_v8  ;;  %v631_v58 = vpop.permute.xlu1 %630 }
 0x374   :  { %2261 = vmatmul.mubr.msk.f32.vlgmr.msra.gmra.mrb[8].mxu1 %vm133_vm2, %v551_v55 }
 0x375   :  { %2270 = vmatprep.mubr.msk.f32.mxu1 %vm2494_vm1, %v2493_v8 }
 0x376   :  { %v629_v61 = vpop.permute.xlu1 %628 }
 0x43f   :  { %v383_v56 = vpop.f32.mrb[0].mxu0 }
 0x440   :  { %v2247_v57 = vpop.f32.mrb[1].mxu0  ;;  %2255 = vmatprep.mubr.msk.f32.mxu0 %vm133_vm2, %v383_v56 }
 0x443   :  { %v459_v59 = vpop.f32.mrb[6].mxu1 }
 0x444   :  { %v2252_v60 = vpop.f32.mrb[7].mxu1  ;;  %2256 = vmatmul.mubr.msk.f32.vlgmr.msra.gmra.mrb[2].mxu0 %vm133_vm2, %v459_v59 }
 0x445   :  { %2264 = vmatpush3.xpose.msk.msra.mxu0 %vm133_vm2, %v631_v58  ;;  %2265 = vmatprep.mubr.msk.f32.mxu0 %vm2494_vm1, %v2493_v8 }
 0x446   :  { %2273 = vmatprep.subr.mxu0 %v2493_v8 }
 0x447   :  { %v624_v62 = vpop.f32.mrb[8].mxu1 }
 0x448   :  { %v706_v63 = vmul.f32 0.35355338, %v624_v62  ;;  %v2262_v0 = vpop.f32.mrb[9].mxu1  ;;  %2266 = vmatmul.mubr.msk.f32.vlgmr.msra.gmra.mrb[4].mxu0 %vm133_vm2, %v629_v61 }
 0x449   :  { %2275 = vmatprep.mubr.msk.f32.mxu0 %vm2494_vm1, %v2493_v8 }
 0x44a   :  { %v708_v3 = vadd.f32 %v706_v63, %v2618_v24 }
 0x44c   :  { %v710_v6 = vsel %vm133_vm2, %v708_v3, -inf }
 0x44d   :  { %711 = vmax.xlane.f32.xlu1 %v710_v6 }
 0x45e   :  { %732 = vrot.lane.b32.xlu1 %v2594_v16, %s2501_s13 }
 0x462   :  { %971 = vrot.lane.b32.xlu1 %v2594_v16, %s2502_s14 }
 0x466   :  { %1051 = vrot.lane.b32.xlu1 %v2597_v17, %s2503_s15 }
 0x46a   :  { %1049 = vrot.lane.b32.xlu1 %v2597_v17, %s2502_s14 }
 0x4da   :  { %v712_v9 = vpop.xlane.xlu1 %711 }
 0x4db   :  { %v716_v11 = vsub.f32 %v708_v3, %v712_v9 }
 0x4dd   :  { %v718_v13 = vmul.f32 1.442695, %v716_v11 }
 0x4de   :  { %v733_v14 = vpop.permute.xlu1 %732 }
 0x4df   :  { %2429 = vpow2.f32 %v718_v13  ;;  %2269 = vmatpush3.msra.mxu1 %v733_v14 }
 0x4e0   :  { %2283 = vmatprep.subr.mxu1 %v2493_v8 }
 0x4e2   :  { %v972_v26 = vpop.permute.xlu1 %971 }
 0x4e6   :  { %v1052_v31 = vpop.permute.xlu1 %1051 }
 0x4e9   :  { %v2430_v15 = vpop.eup %2429 }
 0x4ea   :  { %v722_v18 = vsel %vm133_vm2, %v2430_v15, 0.0 }
 0x4eb   :  { %723 = vadd.xlane.f32.xlu0 %v722_v18 }
 0x501   :  { %973 = vrot.lane.b32.xlu0 %v2594_v16, %s2503_s15 }
 0x51b   :  { %v702_v19 = vpop.f32.mrb[4].mxu0 }
 0x51c   :  { %v707_v20 = vmul.f32 0.35355338, %v702_v19  ;;  %v2267_v21 = vpop.f32.mrb[5].mxu0 }
 0x51e   :  { %v709_v22 = vadd.f32 %v707_v20, %v2621_v29 }
 0x520   :  { %v713_v23 = vsel %vm133_vm2, %v709_v22, -inf }
 0x521   :  { %714 = vmax.xlane.f32.xlu0 %v713_v23 }
 0x537   :  { %808 = vrot.lane.b32.xlu0 %v2597_v17, %s2501_s13 }
 0x53b   :  { %1153 = vrot.lane.b32.xlu0 %v2594_v16, %s2504_s16 }
 0x53f   :  { %1229 = vrot.lane.b32.xlu0 %v2597_v17, %s2504_s16 }
 0x543   :  { %1306 = vrot.lane.b32.xlu0 %v2554_v2, %s2500_s12  ;;  %v1050_v2 = vpop.permute.xlu1 %1049 }
 0x547   :  { %1394 = vrot.lane.b32.xlu0 %v2594_v16, %s2505_s17 }
 0x54b   :  { %1472 = vrot.lane.b32.xlu0 %v2597_v17, %s2505_s17 }
 0x54f   :  { %1470 = vrot.lane.b32.xlu0 %v2597_v17, %s2506_s18 }
 0x578   :  { %v724_v25 = vpop.xlane.xlu0 %723 }
 0x579   :  { %2431 = vrcp.f32 %v724_v25 }
 0x57c   :  { %v974_v30 = vpop.permute.xlu0 %973 }
 0x583   :  { %v2432_v27 = vpop.eup %2431 }
 0x584   :  { %v730_v28 = vmul.f32 %v2432_v27, %v2430_v15 }
 0x586   :  { %2271 = vmatmul.mubr.msk.f32.vlgmr.msra.gmra.mrb[10].mxu1 %vm133_vm2, %v730_v28 }
 0x587   :  { %2284 = vmatpush3.xpose.msk.msra.mxu1 %vm133_vm2, %v974_v30  ;;  %2285 = vmatprep.mubr.msk.f32.mxu1 %vm2494_vm1, %v2493_v8 }
 0x588   :  { %2288 = vmatprep.subr.mxu1 %v2493_v8 }
 0x58a   :  { %2286 = vmatmul.mubr.msk.f32.vlgmr.msra.gmra.mrb[12].mxu1 %vm133_vm2, %v972_v26 }
 0x58b   :  { %2289 = vmatpush3.xpose.msk.msra.mxu1 %vm133_vm2, %v1052_v31  ;;  %2290 = vmatprep.mubr.msk.f32.mxu1 %vm2494_vm1, %v2493_v8 }
 0x58c   :  { %2298 = vmatprep.subr.mxu1 %v2493_v8 }
 0x58e   :  { %2291 = vmatmul.mubr.msk.f32.vlgmr.msra.gmra.mrb[14].mxu1 %vm133_vm2, %v1050_v2 }
 0x58f   :  { %2300 = vmatprep.mubr.msk.f32.mxu1 %vm2494_vm1, %v2493_v8 }
 0x5ae   :  { %v715_v32 = vpop.xlane.xlu0 %714 }
 0x5af   :  { %v717_v33 = vsub.f32 %v709_v22, %v715_v32 }
 0x5b1   :  { %v720_v34 = vmul.f32 1.442695, %v717_v33 }
 0x5b2   :  { %v809_v35 = vpop.permute.xlu0 %808 }
 0x5b3   :  { %2433 = vpow2.f32 %v720_v34  ;;  %2274 = vmatpush3.msra.mxu0 %v809_v35 }
 0x5b6   :  { %v1154_v36 = vpop.permute.xlu0 %1153 }
 0x5ba   :  { %v1230_v37 = vpop.permute.xlu0 %1229 }
 0x5bb   :  { %2299 = vmatpush3.msra.mxu1 %v1230_v37 }
 0x5bc   :  { %2308 = vmatprep.subr.mxu1 %v2493_v8 }
 0x5bd   :  { %v2434_v38 = vpop.eup %2433 }
 0x5be   :  { %v725_v39 = vsel %vm133_vm2, %v2434_v38, 0.0  ;;  %v1307_v15 = vpop.permute.xlu0 %1306 }
 0x5bf   :  { %726 = vadd.xlane.f32.xlu1 %v725_v39 }
 0x5c2   :  { %v1395_v20 = vpop.permute.xlu0 %1394 }
 0x5c6   :  { %v1473_v23 = vpop.permute.xlu0 %1472 }
 0x5ca   :  { %v1471_v28 = vpop.permute.xlu0 %1470 }
 0x64c   :  { %v727_v40 = vpop.xlane.xlu1 %726 }
 0x64d   :  { %2435 = vrcp.f32 %v727_v40 }
 0x657   :  { %v2436_v41 = vpop.eup %2435 }
 0x658   :  { %v731_v42 = vmul.f32 %v2436_v41, %v2434_v38 }
 0x659   :  { %v804_v43 = vpop.f32.mrb[10].mxu1 }
 0x65a   :  { %v2272_v44 = vpop.f32.mrb[11].mxu1  ;;  %2276 = vmatmul.mubr.msk.f32.vlgmr.msra.gmra.mrb[6].mxu0 %vm133_vm2, %v731_v42 }
 0x65b   :  { %2280 = vmatprep.mubr.msk.f32.mxu0 %vm133_vm2, %v804_v43 }
 0x65d   :  { %v1045_v45 = vpop.f32.mrb[12].mxu1 }
 0x65e   :  { %v1127_v46 = vmul.f32 0.35355338, %v1045_v45  ;;  %v2287_v47 = vpop.f32.mrb[13].mxu1 }
 0x660   :  { %v1129_v48 = vadd.f32 %v1127_v46, %v2618_v24 }
 0x661   :  { %v1123_v49 = vpop.f32.mrb[14].mxu1 }
 0x662   :  { %v1128_v50 = vmul.f32 0.35355338, %v1123_v49  ;;  %v2292_v51 = vpop.f32.mrb[15].mxu1  ;;  %v1131_v52 = vsel %vm133_vm2, %v1129_v48, -inf }
 0x663   :  { %1132 = vmax.xlane.f32.xlu1 %v1131_v52 }
 0x664   :  { %v1130_v53 = vadd.f32 %v1128_v50, %v2621_v29 }
 0x666   :  { %v1134_v54 = vsel %vm133_vm2, %v1130_v53, -inf }
 0x667   :  { %1135 = vmax.xlane.f32.xlu1 %v1134_v54 }
 0x6f0   :  { %v1133_v55 = vpop.xlane.xlu1 %1132 }
 0x6f1   :  { %v1137_v56 = vsub.f32 %v1129_v48, %v1133_v55 }
 0x6f3   :  { %v1139_v57 = vmul.f32 1.442695, %v1137_v56 }
 0x6f4   :  { %v1136_v58 = vpop.xlane.xlu1 %1135 }
 0x6f5   :  { %2437 = vpow2.f32 %v1139_v57  ;;  %v1138_v59 = vsub.f32 %v1130_v53, %v1136_v58 }
 0x6f7   :  { %v1141_v60 = vmul.f32 1.442695, %v1138_v59 }
 0x6f9   :  { %2439 = vpow2.f32 %v1141_v60 }
 0x6ff   :  { %v2438_v61 = vpop.eup %2437 }
 0x700   :  { %v1143_v62 = vsel %vm133_vm2, %v2438_v61, 0.0 }
 0x701   :  { %1144 = vadd.xlane.f32.xlu1 %v1143_v62 }
 0x703   :  { %v2440_v63 = vpop.eup %2439 }
 0x704   :  { %v1146_v0 = vsel %vm133_vm2, %v2440_v63, 0.0 }
 0x705   :  { %1147 = vadd.xlane.f32.xlu1 %v1146_v0 }
 0x716   :  { %885 = vrot.lane.b32.xlu1 %v2549_v1, %s2500_s12 }
 0x71a   :  { %1392 = vrot.lane.b32.xlu1 %v2594_v16, %s2506_s18 }
 0x72d   :  { %v880_v3 = vpop.f32.mrb[6].mxu0 }
 0x72e   :  { %v2277_v6 = vpop.f32.mrb[7].mxu0 }
 0x78e   :  { %v1145_v9 = vpop.xlane.xlu1 %1144 }
 0x78f   :  { %2441 = vrcp.f32 %v1145_v9 }
 0x792   :  { %v1148_v11 = vpop.xlane.xlu1 %1147 }
 0x793   :  { %2443 = vrcp.f32 %v1148_v11 }
 0x796   :  { %v886_v13 = vpop.permute.xlu1 %885 }
 0x797   :  { %2278 = vmatprep.subr.mxu0 %v886_v13 }
 0x798   :  { %2279 = vmatpush3.msra.mxu0 %v886_v13 }
 0x799   :  { %v2442_v14 = vpop.eup %2441  ;;  %2281 = vmatmul.mubr.msk.f32.vlgmr.msra.gmra.mrb[2].mxu0 %vm133_vm2, %v880_v3  ;;  %2293 = vmatprep.subr.mxu0 %v2493_v8 }
 0x79a   :  { %v1151_v18 = vmul.f32 %v2442_v14, %v2438_v61  ;;  %2294 = vmatpush3.msra.mxu0 %v1154_v36  ;;  %2295 = vmatprep.mubr.msk.f32.mxu0 %vm2494_vm1, %v2493_v8  ;;  %v1393_v21 = vpop.permute.xlu1 %1392 }
 0x79b   :  { %2303 = vmatprep.subr.mxu0 %v1307_v15 }
 0x79d   :  { %v2444_v1 = vpop.eup %2443  ;;  %2296 = vmatmul.mubr.msk.f32.vlgmr.msra.gmra.mrb[8].mxu0 %vm133_vm2, %v1151_v18 }
 0x79e   :  { %v1152_v19 = vmul.f32 %v2444_v1, %v2440_v63  ;;  %2304 = vmatpush3.msra.mxu0 %v1307_v15 }
 0x79f   :  { %2313 = vmatprep.subr.mxu0 %v2493_v8 }
 0x7a0   :  { %2301 = vmatmul.mubr.msk.f32.vlgmr.msra.gmra.mrb[16].mxu1 %vm133_vm2, %v1152_v19  ;;  %v24_v19 = vld [vmem:[%s2823_s2 + $0x8] sm:$0xff] }
 0x7a1   :  { %2309 = vmatpush3.xpose.msk.msra.mxu1 %vm133_vm2, %v1395_v20  ;;  %2310 = vmatprep.mubr.msk.f32.mxu1 %vm2494_vm1, %v2493_v8  ;;  %v26_v20 = vld [vmem:[%s2823_s2 + $0x18] sm:$0xff] }
 0x7a2   :  { %2318 = vmatprep.subr.mxu1 %v2493_v8 }
 0x7a4   :  { %2311 = vmatmul.mubr.msk.f32.vlgmr.msra.gmra.mrb[18].mxu1 %vm133_vm2, %v1393_v21  ;;  %v28_v21 = vld [vmem:[%s2823_s2 + $0x28] sm:$0xff] }
 0x7a5   :  { %2320 = vmatprep.mubr.msk.f32.mxu1 %vm2494_vm1, %v2493_v8 }
 0x870   :  { %v1225_v22 = vpop.f32.mrb[8].mxu0 }
 0x871   :  { %v2297_v25 = vpop.f32.mrb[9].mxu0  ;;  %2305 = vmatprep.mubr.msk.f32.mxu0 %vm133_vm2, %v1225_v22  ;;  %v2371_v22 = vpack.c.bf16 %v26_v20, %v24_v19 }
 0x873   :  { %v1301_v26 = vpop.f32.mrb[16].mxu1 }
 0x874   :  { %v2302_v27 = vpop.f32.mrb[17].mxu1  ;;  %2306 = vmatmul.mubr.msk.f32.vlgmr.msra.gmra.mrb[2].mxu0 %vm133_vm2, %v1301_v26  ;;  %v1952_v26 = vld [vmem:[%s2824_s3] sm:$0xff] }
 0x875   :  { %2314 = vmatpush3.xpose.msk.msra.mxu0 %vm133_vm2, %v1473_v23  ;;  %2315 = vmatprep.mubr.msk.f32.mxu0 %vm2494_vm1, %v2493_v8  ;;  %v30_v23 = vld [vmem:[%s2823_s2 + $0x38] sm:$0xff]  ;;  %v1953_v27 = vld [vmem:[%s2824_s3 + $0x8] sm:$0xff] }
 0x876   :  { %2323 = vmatprep.subr.mxu0 %v2493_v8  ;;  %v2375_v25 = vpack.c.bf16 %v30_v23, %v28_v21 }
 0x877   :  { %v1466_v30 = vpop.f32.mrb[18].mxu1 }
 0x878   :  { %v1548_v31 = vmul.f32 0.35355338, %v1466_v30  ;;  %v2312_v2 = vpop.f32.mrb[19].mxu1  ;;  %2316 = vmatmul.mubr.msk.f32.vlgmr.msra.gmra.mrb[10].mxu0 %vm133_vm2, %v1471_v28  ;;  %v1954_v28 = vld [vmem:[%s2824_s3 + $0x10] sm:$0xff]  ;;  %v2379_v30 = vpack.c.bf16 %v1953_v27, %v1952_v26 }
 0x879   :  { %2325 = vmatprep.mubr.msk.f32.mxu0 %vm2494_vm1, %v2493_v8 }
 0x87a   :  { %v1550_v32 = vadd.f32 %v1548_v31, %v2618_v24  ;;  %v1955_v31 = vld [vmem:[%s2824_s3 + $0x18] sm:$0xff] }
 0x87b   :  { %v2383_v2 = vpack.c.bf16 %v1955_v31, %v1954_v28 }
 0x87c   :  { %v1552_v33 = vsel %vm133_vm2, %v1550_v32, -inf }
 0x87d   :  { %1553 = vmax.xlane.f32.xlu1 %v1552_v33  ;;  %v1957_v33 = vld [vmem:[%s2824_s3 + $0x28] sm:$0xff] }
 0x90a   :  { %v1554_v34 = vpop.xlane.xlu1 %1553 }
 0x90b   :  { %v1558_v35 = vsub.f32 %v1550_v32, %v1554_v34  ;;  %v1956_v32 = vld [vmem:[%s2824_s3 + $0x20] sm:$0xff] }
 0x90c   :  { %v2387_v34 = vpack.c.bf16 %v1957_v33, %v1956_v32 }
 0x90d   :  { %v1560_v36 = vmul.f32 1.442695, %v1558_v35 }
 0x90f   :  { %2445 = vpow2.f32 %v1560_v36 }
 0x919   :  { %v2446_v42 = vpop.eup %2445 }
 0x91a   :  { %v1564_v8 = vsel %vm133_vm2, %v2446_v42, 0.0 }
 0x94b   :  { %v1544_v37 = vpop.f32.mrb[10].mxu0 }
 0x94c   :  { %v1549_v38 = vmul.f32 0.35355338, %v1544_v37  ;;  %v2317_v39 = vpop.f32.mrb[11].mxu0 }
 0x94e   :  { %v1551_v40 = vadd.f32 %v1549_v38, %v2621_v29 }
 0x950   :  { %v1555_v41 = vsel %vm133_vm2, %v1551_v40, -inf }
 0x951   :  { %1556 = vmax.xlane.f32.xlu0 %v1555_v41 }
 0x955   :  { %1565 = vadd.xlane.f32.xlu0 %v1564_v8 }
 0x96b   :  { %1574 = vrot.lane.b32.xlu0 %v2594_v16, %s2507_s19 }
 0x9de   :  { %v1557_v24 = vpop.xlane.xlu0 %1556 }
 0x9df   :  { %v1559_v43 = vsub.f32 %v1551_v40, %v1557_v24 }
 0x9e1   :  { %v1562_v44 = vmul.f32 1.442695, %v1559_v43 }
 0x9e2   :  { %v1566_v45 = vpop.xlane.xlu0 %1565 }
 0x9e3   :  { %2447 = vpow2.f32 %v1562_v44 }
 0x9e4   :  { %2449 = vrcp.f32 %v1566_v45 }
 0x9e6   :  { %v1575_v46 = vpop.permute.xlu0 %1574 }
 0x9e7   :  { %2319 = vmatpush3.msra.mxu1 %v1575_v46 }
 0x9e8   :  { %2372 = vmatprep.subr.bf16.mxu1 %v2371_v22 }
 0x9ed   :  { %v2448_v47 = vpop.eup %2447 }
 0x9ee   :  { %v2450_v29 = vpop.eup %2449  ;;  %v1567_v48 = vsel %vm133_vm2, %v2448_v47, 0.0 }
 0x9ef   :  { %v1572_v49 = vmul.f32 %v2450_v29, %v2446_v42  ;;  %1568 = vadd.xlane.f32.xlu1 %v1567_v48 }
 0x9f1   :  { %2321 = vmatmul.mubr.msk.f32.vlgmr.msra.gmra.mrb[20].mxu1 %vm133_vm2, %v1572_v49 }
 0x9f2   :  { %2374 = vmatpush3.bf16.msra.mxu1 %v2371_v22 }
 0x9f3   :  { %2376 = vmatprep.subr.bf16.mxu1 %v2375_v25 }
 0x9f6   :  { %2378 = vmatpush3.bf16.msra.mxu1 %v2375_v25 }
 0xa00   :  { %1650 = vrot.lane.b32.xlu1 %v2597_v17, %s2507_s19 }
 0xa04   :  { %1727 = vrot.lane.b32.xlu1 %v2561_v4, %s2500_s12  ;;  %v126_v4 = vsub.s32 1, %v2581_v10 }
 0xa06   :  { %v127_v57 = vrot.slane %v2591_v12, %v126_v4 }
 0xa08   :  { %v129_v58 = vadd.f32 %v127_v57, %v2575_v7  ;;  %v128_v59 = vadd.f32 %v127_v57, %v2566_v5  ;;  %v1958_v57 = vld [vmem:[%s2824_s3 + $0x30] sm:$0xff] }
 0xa7c   :  { %v1569_v16 = vpop.xlane.xlu1 %1568 }
 0xa7d   :  { %2451 = vrcp.f32 %v1569_v16  ;;  %v1861_v16 = vsub.s32 3, %v2581_v10 }
 0xa80   :  { %v1651_v50 = vpop.permute.xlu1 %1650 }
 0xa81   :  { %2324 = vmatpush3.msra.mxu0 %v1651_v50 }
 0xa84   :  { %v1728_v51 = vpop.permute.xlu1 %1727 }
 0xa85   :  { %2328 = vmatprep.subr.mxu0 %v1728_v51 }
 0xa87   :  { %v2452_v52 = vpop.eup %2451 }
 0xa88   :  { %v1573_v53 = vmul.f32 %v2452_v52, %v2448_v47  ;;  %v1853_v47 = vsub.s32 2, %v2581_v10 }
 0xa8a   :  { %2326 = vmatmul.mubr.msk.f32.vlgmr.msra.gmra.mrb[12].mxu0 %vm133_vm2, %v1573_v53  ;;  %v1854_v49 = vrot.slane %v2591_v12, %v1853_v47 }
 0xa8b   :  { %2329 = vmatpush3.msra.mxu0 %v1728_v51  ;;  %v1862_v51 = vrot.slane %v2591_v12, %v1861_v16 }
 0xa8c   :  { %2380 = vmatprep.subr.bf16.mxu0 %v2379_v30 }
 0xac4   :  { %v1646_v54 = vpop.f32.mrb[20].mxu1 }
 0xac5   :  { %v2322_v55 = vpop.f32.mrb[21].mxu1  ;;  %2330 = vmatprep.mubr.msk.f32.mxu0 %vm133_vm2, %v1646_v54 }
 0xb5d   :  { %v1722_v56 = vpop.f32.mrb[12].mxu0 }
 0xb5e   :  { %v2327_v17 = vpop.f32.mrb[13].mxu0  ;;  %2331 = vmatmul.mubr.msk.f32.vlgmr.msra.gmra.mrb[2].mxu0 %vm133_vm2, %v1722_v56 }
 0xb5f   :  { %2382 = vmatpush3.bf16.msra.mxu0 %v2379_v30 }
 0xb60   :  { %2384 = vmatprep.subr.bf16.mxu0 %v2383_v2 }
 0xb63   :  { %2386 = vmatpush3.bf16.msra.mxu0 %v2383_v2 }
 0xb64   :  { %2388 = vmatprep.subr.bf16.mxu0 %v2387_v34 }
 0xb67   :  { %2390 = vmatpush3.bf16.msra.mxu0 %v2387_v34 }
 0xc31   :  { %v2332_v60 = vpop.f32.mrb[2].mxu0 }
 0xc32   :  { %v2395_v61 = vadd.f32 %v2332_v60, %v129_v58  ;;  %v1802_v62 = vpop.f32.mrb[3].mxu0  ;;  %v1959_v58 = vld [vmem:[%s2824_s3 + $0x38] sm:$0xff]  ;;  %v1867_v60 = vsub.s32 4, %v2581_v10  ;;  %s2508_s3 = smov [#allocation2]  }
 0xc33   :  { %v2396_v63 = vadd.f32 %v1802_v62, %v128_v59  ;;  %v2391_v59 = vpack.c.bf16 %v1959_v58, %v1958_v57  ;;  %s2107_s15 = sshll.u32 %s2508_s3, 4  ;;  %s2108_s15 = int_to_ptr.vmem [resolvable:$true] %s2107_s15 }
 0xc34   :  { %v1816_v0 = vsel %vm36_vm0, %v2395_v61, 0.0  ;;  %s2469_s16 = scalar_lea.vmem %s2108_s15, 256  ;;  %p2474_p1 = scmp.lt.s32.totalorder %s2108_s15, %s2108_s15 }
 0xc35   :  { %1817 = vadd.xlane.f32.xlu1 %v1816_v0  ;;  %v1813_v3 = vsel %vm36_vm0, %v2396_v63, 0.0  ;;  %2392 = vmatprep.subr.bf16.mxu0 %v2391_v59  ;;  %p2470_p0 = scmp.ne.s32.totalorder %s2108_s15, %s2469_s16  ;;  %p2475_p2 = scmp.lt.s32.totalorder %s2469_s16, %s2469_s16 }
 0xc36   :  { %1814 = vadd.xlane.f32.xlu0 %v1813_v3  ;;  %2394 = vmatpush3.bf16.msra.mxu0 %v2391_v59 }
 0xc37   :  { %p2476_p3 = por %p2475_p2, %p2474_p1 }
 0xc39   :  { %p2477_p4 = pnand %p2476_p3, %p2470_p0 }
 0xcc2   :  { %v1818_v6 = vpop.xlane.xlu1 %1817 }
 0xcc3   :  { %v1820_v9 = vmul.f32 0.03125, %v1818_v6  ;;  %v1815_v11 = vpop.xlane.xlu0 %1814 }
 0xcc4   :  { %v1819_v13 = vmul.f32 0.03125, %v1815_v11  ;;  %v1962_v11 = vsub.s32 5, %v2581_v10 }
 0xcc5   :  { %v2746_v14 = vsub.f32 %v2395_v61, %v1820_v9  ;;  %v1868_v61 = vrot.slane %v2591_v12, %v1867_v60 }
 0xcc6   :  { %v1821_v15 = vsub.f32 %v2396_v63, %v1819_v13  ;;  %v1963_v13 = vrot.slane %v2591_v12, %v1962_v11 }
 0xcc7   :  { %v1824_v18 = vmul.f32 %v2746_v14, %v2746_v14  ;;  %v1856_v54 = vmul.f32 %v1854_v49, %v2746_v14 }
 0xcc8   :  { %v1823_v7 = vmul.f32 %v1821_v15, %v1821_v15  ;;  %v1855_v50 = vmul.f32 %v1854_v49, %v1821_v15 }
 0xcc9   :  { %v1828_v1 = vsel %vm36_vm0, %v1824_v18, 0.0 }
 0xcca   :  { %v1825_v5 = vsel %vm36_vm0, %v1823_v7, 0.0 }
 0xccb   :  { %1826 = vadd.xlane.f32.xlu0 %v1825_v5 }
 0xccf   :  { %1829 = vadd.xlane.f32.xlu0 %v1828_v1 }
 0xd58   :  { %v1827_v35 = vpop.xlane.xlu0 %1826 }
 0xd59   :  { %v1831_v36 = vmul.f32 0.032258064, %v1827_v35 }
 0xd5b   :  { %2453 = vrsqrt.f32 %v1831_v36  ;;  %vm1835_vm5 = vcmp.eq.f32.partialorder %v1831_v36, inf  ;;  %v1838_v41 = vand.u32 2147483648, %v1831_v36  ;;  %vm1837_vm6 = vcmp.eq.f32.partialorder %v1831_v36, 0.0 }
 0xd5c   :  { %v1830_v37 = vpop.xlane.xlu0 %1829 }
 0xd5d   :  { %v1832_v38 = vmul.f32 0.032258064, %v1830_v37 }
 0xd5f   :  { %2455 = vrsqrt.f32 %v1832_v38  ;;  %vm1842_vm7 = vcmp.eq.f32.partialorder %v1832_v38, inf  ;;  %v1845_v45 = vand.u32 2147483648, %v1832_v38  ;;  %vm1844_vm8 = vcmp.eq.f32.partialorder %v1832_v38, 0.0 }
 0xd65   :  { %v2454_v39 = vpop.eup %2453 }
 0xd66   :  { %v1834_v40 = vmul.f32 %v2454_v39, %v1831_v36 }
 0xd68   :  { %v1836_v42 = vsel %vm1835_vm5, %v1831_v36, %v1834_v40 }
 0xd69   :  { %v2456_v8 = vpop.eup %2455  ;;  %v1839_v24 = vsel %vm1837_vm6, %v1838_v41, %v1836_v42 }
 0xd6a   :  { %v1841_v43 = vmul.f32 %v2456_v8, %v1832_v38  ;;  %v1847_v44 = vadd.f32 1e-06, %v1839_v24 }
 0xd6c   :  { %v1843_v46 = vsel %vm1842_vm7, %v1832_v38, %v1841_v43  ;;  %2457 = vrcp.f32 %v1847_v44 }
 0xd6d   :  { %v1846_v29 = vsel %vm1844_vm8, %v1845_v45, %v1843_v46  ;;  %v2088_v46 = vsub.s32 6, %v2581_v10 }
 0xd6e   :  { %v1848_v48 = vadd.f32 1e-06, %v1846_v29  ;;  %v2096_v29 = vsub.s32 7, %v2581_v10 }
 0xd6f   :  { %v2089_v47 = vrot.slane %v2591_v12, %v2088_v46 }
 0xd70   :  { %2459 = vrcp.f32 %v1848_v48  ;;  %v2097_v49 = vrot.slane %v2591_v12, %v2096_v29 }
 0xd76   :  { %v2458_v52 = vpop.eup %2457 }
 0xd77   :  { %v1857_v53 = vmul.f32 %v2458_v52, %v1855_v50 }
 0xd79   :  { %v1863_v55 = vadd.f32 %v1862_v51, %v1857_v53 }
 0xd7a   :  { %v2460_v56 = vpop.eup %2459 }
 0xd7b   :  { %v1858_v17 = vmul.f32 %v2460_v56, %v1856_v54  ;;  %2341 = vmatprep.mubr.msk.f32.mxu1 %vm36_vm0, %v1863_v55 }
 0xd7d   :  { %v1864_v4 = vadd.f32 %v1862_v51, %v1858_v17 }
 0xd7f   :  { %2342 = vmatmul.mubr.msk.f32.vlgmr.msra.gmra.mrb[22].mxu1 %vm36_vm0, %v1864_v4 }
 0xe52   :  { %v2343_v62 = vpop.f32.mrb[22].mxu1 }
 0xe53   :  { %v1947_v63 = vadd.f32 %v2343_v62, %v1868_v61  ;;  %v1941_v0 = vpop.f32.mrb[23].mxu1 }
 0xe54   :  { %v1942_v3 = vadd.f32 %v1941_v0, %v1868_v61 }
 0xe55   :  { %v1951_v9 = vmax.f32 %v1947_v63, 0.0 }
 0xe56   :  { %v1950_v6 = vmax.f32 %v1942_v3, 0.0 }
 0xe58   :  { %2360 = vmatprep.mubr.msk.f32.mxu0 %vm1964_vm9, %v1950_v6 }
 0xe59   :  { %2361 = vmatmul.mubr.msk.f32.vlgmr.msra.gmra.mrb[14].mxu0 %vm1964_vm9, %v1951_v9 }
 0xf2c   :  { %v2362_v14 = vpop.f32.mrb[14].mxu0 }
 0xf2d   :  { %v2043_v15 = vadd.f32 %v2362_v14, %v1963_v13  ;;  %v2037_v7 = vpop.f32.mrb[15].mxu0 }
 0xf2e   :  { %v2038_v5 = vadd.f32 %v2037_v7, %v1963_v13 }
 0xf2f   :  { %v2047_v18 = vadd.f32 %v2043_v15, %v1864_v4 }
 0xf30   :  { %v2046_v1 = vadd.f32 %v2038_v5, %v1863_v55 }
 0xf31   :  { %v2051_v19 = vsel %vm36_vm0, %v2047_v18, 0.0 }
 0xf32   :  { %2052 = vadd.xlane.f32.xlu0 %v2051_v19  ;;  %v2048_v20 = vsel %vm36_vm0, %v2046_v1, 0.0 }
 0xf33   :  { %2049 = vadd.xlane.f32.xlu1 %v2048_v20 }
 0xfbf   :  { %v2053_v21 = vpop.xlane.xlu0 %2052 }
 0xfc0   :  { %v2055_v22 = vmul.f32 0.03125, %v2053_v21  ;;  %v2050_v23 = vpop.xlane.xlu1 %2049 }
 0xfc1   :  { %v2054_v25 = vmul.f32 0.03125, %v2050_v23 }
 0xfc2   :  { %v2057_v26 = vsub.f32 %v2047_v18, %v2055_v22 }
 0xfc3   :  { %v2056_v27 = vsub.f32 %v2046_v1, %v2054_v25 }
 0xfc4   :  { %v2059_v28 = vmul.f32 %v2057_v26, %v2057_v26  ;;  %v2091_v48 = vmul.f32 %v2089_v47, %v2057_v26 }
 0xfc5   :  { %v2058_v30 = vmul.f32 %v2056_v27, %v2056_v27  ;;  %v2090_v50 = vmul.f32 %v2089_v47, %v2056_v27 }
 0xfc6   :  { %v2063_v31 = vsel %vm36_vm0, %v2059_v28, 0.0 }
 0xfc7   :  { %2064 = vadd.xlane.f32.xlu0 %v2063_v31  ;;  %v2060_v2 = vsel %vm36_vm0, %v2058_v30, 0.0 }
 0xfc8   :  { %2061 = vadd.xlane.f32.xlu1 %v2060_v2 }
0x1054   :  { %v2065_v32 = vpop.xlane.xlu0 %2064 }
0x1055   :  { %v2067_v33 = vmul.f32 0.032258064, %v2065_v32  ;;  %v2062_v34 = vpop.xlane.xlu1 %2061 }
0x1056   :  { %v2066_v35 = vmul.f32 0.032258064, %v2062_v34 }
0x1057   :  { %2461 = vrsqrt.f32 %v2067_v33  ;;  %vm2077_vm10 = vcmp.eq.f32.partialorder %v2067_v33, inf  ;;  %v2080_v39 = vand.u32 2147483648, %v2067_v33  ;;  %vm2079_vm11 = vcmp.eq.f32.partialorder %v2067_v33, 0.0 }
0x1058   :  { %2463 = vrsqrt.f32 %v2066_v35  ;;  %vm2070_vm12 = vcmp.eq.f32.partialorder %v2066_v35, inf  ;;  %v2073_v42 = vand.u32 2147483648, %v2066_v35  ;;  %vm2072_vm13 = vcmp.eq.f32.partialorder %v2066_v35, 0.0 }
0x1061   :  { %v2462_v36 = vpop.eup %2461 }
0x1062   :  { %v2464_v37 = vpop.eup %2463  ;;  %v2076_v38 = vmul.f32 %v2462_v36, %v2067_v33 }
0x1063   :  { %v2069_v40 = vmul.f32 %v2464_v37, %v2066_v35 }
0x1064   :  { %v2078_v41 = vsel %vm2077_vm10, %v2067_v33, %v2076_v38 }
0x1065   :  { %v2081_v8 = vsel %vm2079_vm11, %v2080_v39, %v2078_v41  ;;  %v2071_v24 = vsel %vm2070_vm12, %v2066_v35, %v2069_v40 }
0x1066   :  { %v2083_v43 = vadd.f32 1e-06, %v2081_v8  ;;  %v2074_v44 = vsel %vm2072_vm13, %v2073_v42, %v2071_v24 }
0x1067   :  { %v2082_v45 = vadd.f32 1e-06, %v2074_v44 }
0x1068   :  { %2465 = vrcp.f32 %v2083_v43 }
0x1069   :  { %2467 = vrcp.f32 %v2082_v45 }
0x1072   :  { %v2466_v16 = vpop.eup %2465 }
0x1073   :  { %v2468_v51 = vpop.eup %2467  ;;  %v2093_v52 = vmul.f32 %v2466_v16, %v2091_v48 }
0x1074   :  { %v2092_v53 = vmul.f32 %v2468_v51, %v2090_v50 }
0x1075   :  { %v2099_v54 = vadd.f32 %v2097_v49, %v2093_v52 }
0x1076   :  { %v2098_v55 = vadd.f32 %v2097_v49, %v2092_v53 }
0x1077   :  { %2101 = vst.msk [vmem:[#allocation2 + $0x8] sm:$0xff] %vm36_vm0, %v2099_v54 }
0x1078   :  { %2100 = vst.msk [vmem:[#allocation2] sm:$0xff] %vm36_vm0, %v2098_v55 }
0x1079   :  { %2480 = shalt.err (!%p2477_p4)
}
0x107a   :  { %s2481_s19 = scalar_lea.hbm %s2826_s5, 256 }
0x107b   :  { %p2482_p5 = scmp.ne.s32.totalorder %s2826_s5, %s2481_s19  ;;  %p2485_p6 = scmp.lt.u32.totalorder %s2481_s19, %s2826_s5 }
0x107d   :  { %p2487_p7 = pnand %p2485_p6, %p2482_p5 }
0x107f   :  { %2490 = shalt.err (!%p2487_p7)
}
0x1080   :  { %s2509_s24 = smov 128   ;;  %s2510_s25 = smov 8  }
0x1081   :  { %2113 = dma.vmem_to_hbm [thread:$0]  %s2108_s15, 256, %s2826_s5, [#allocation3], %s2509_s24, %s2509_s24, %s2510_s25  }
0x1082   :  { %2491 = dma.done.wait [#allocation3], 256  }
0x1083   :  { %2492 = vsyncadd [#allocation3], 4294967040 }
0x1084   :  { %2117 = vsyncpa [#allocation3], 1 }

</bundles_post_ra>
